<compile_context>
chip_gen: v5e
topology: v5e:2x2
jax: 0.10.0
libtpu: 0.0.40
codegen_flags: <defaults>
</compile_context>

<pallas_src>
import jax
import jax.numpy as jnp
from jax.experimental import pallas as pl
from jax.experimental.pallas import tpu as pltpu


def _round_up(a: int, b: int) -> int:
    return ((a + b - 1) // b) * b


def _choose_tf(ff_dim: int, tf: int):
    """Pick the ff tile.

    Fast path (ff % 128 == 0): largest divisor of ff that is a multiple of 128
    and <= tf, so gate/up blocks can point straight into the packed (H, 2F)
    weight.  Otherwise: slow path with a single full-width tile.
    """
    if ff_dim % 128 == 0:
        best = 128
        cand = 256
        limit = min(tf, ff_dim)
        while cand <= limit:
            if ff_dim % cand == 0:
                best = cand
            cand += 128
        return best, True
    return ff_dim, False


def _qwen_mlp_kernel(x_ref, wg_ref, wu_ref, wd_ref, o_ref, acc_ref):
    """grid = (i: token tiles [parallel], j: hidden-out tiles [parallel],
               k: ff tiles [arbitrary / reduction])."""
    k = pl.program_id(2)

    @pl.when(k == 0)
    def _():
        acc_ref[...] = jnp.zeros_like(acc_ref)

    x = x_ref[...]                                                       # [tm, H]
    gate = jnp.dot(x, wg_ref[...], preferred_element_type=jnp.float32)   # [tm, tf]
    up = jnp.dot(x, wu_ref[...], preferred_element_type=jnp.float32)     # [tm, tf]

    # SiluAndMul in f32 (sigmoid -> EUP); cast only for the down-proj MXU dot.
    # NOTE: gate/up are recomputed per j tile when h_tiles > 1 (decode split);
    # that is intentional -- decode is HBM-bound, MXU recompute is free.
    act = (gate * jax.nn.sigmoid(gate)) * up                             # f32

    acc_ref[...] += jnp.dot(act.astype(wd_ref.dtype), wd_ref[...],
                            preferred_element_type=jnp.float32)          # [tm, th]

    @pl.when(k == pl.num_programs(2) - 1)
    def _():
        o_ref[...] = acc_ref[...].astype(o_ref.dtype)


def qwen_mlp(x, w_gate_up, w_down, *, tm: int = 512, tf: int = 512,
             h_tiles: int = 1, vmem_limit_bytes: int | None = None):
    """QWenMLP forward.

    x:         [..., hidden]
    w_gate_up: [hidden, 2*ff]   (gate columns first, then up columns —
                                 matches lmdeploy's SiluAndMul packing)
    w_down:    [ff, hidden]

    tm: token tile.  512 roughly balances MXU vs. weight-streaming on
        v7x/v6e; v6e/v5e prefill can go 1024.
    tf: ff tile.  512 fits v7x's 64 MiB VMEM at H=4096 bf16 with headroom;
        v5e/v6e (128 MiB VMEM) can use 1024.
    h_tiles: split the output hidden axis into this many parallel tiles
        (set to 2 on v7x for decode-sized inputs so both TensorCores work).
    """
    orig_shape = x.shape
    hidden = orig_shape[-1]
    two_ff = w_gate_up.shape[-1]
    ff_dim = two_ff // 2
    assert w_gate_up.shape == (hidden, two_ff)
    assert w_down.shape == (ff_dim, hidden)

    x2d = x.reshape(-1, hidden)
    m = x2d.shape[0]

    # Token tile: round to the dtype sublane pack (8/16/32), pad the token axis.
    pack = {1: 32, 2: 16, 4: 8}.get(jnp.dtype(x.dtype).itemsize, 8)
    tm = _round_up(tm, pack)
    tm_eff = min(tm, _round_up(m, pack))
    m_pad = _round_up(m, tm_eff)
    if m_pad != m:
        x2d = jnp.pad(x2d, ((0, m_pad - m), (0, 0)))

    # ff tile.
    tf_eff, fast = _choose_tf(ff_dim, tf)
    n_ff_tiles = ff_dim // tf_eff

    # Output-hidden tile (v7x decode dual-TensorCore split); default no split.
    th = hidden
    if h_tiles > 1 and hidden % h_tiles == 0 and (hidden // h_tiles) % 128 == 0:
        th = hidden // h_tiles
    n_h_tiles = hidden // th

    if fast:
        # Two BlockSpecs pointing into the SAME packed weight: no HBM copies.
        gate_spec = pl.BlockSpec((hidden, tf_eff), lambda i, j, k: (0, k))
        up_spec = pl.BlockSpec((hidden, tf_eff),
                               lambda i, j, k, n=n_ff_tiles: (0, k + n))
        w_gate_in, w_up_in = w_gate_up, w_gate_up
    else:
        # TODO(synk): slow path materializes two weight copies every call for
        # non-128-aligned ff; pre-split (or zero-pad) the checkpoint at load
        # time to avoid it.
        w_gate_in = w_gate_up[:, :ff_dim]
        w_up_in = w_gate_up[:, ff_dim:]
        gate_spec = pl.BlockSpec((hidden, tf_eff), lambda i, j, k: (0, k))
        up_spec = pl.BlockSpec((hidden, tf_eff), lambda i, j, k: (0, k))

    grid = (m_pad // tm_eff, n_h_tiles, n_ff_tiles)

    # VMEM budget from the actual footprint (leaves headroom on v7x's 64 MiB):
    #   single-buffered x block + double-buffered gate/up/down/out blocks +
    #   f32 accumulator + in-kernel gate/up/act f32 temporaries.
    def _isz(a):
        return jnp.dtype(a.dtype).itemsize

    footprint = (
        tm_eff * hidden * _isz(x)                       # x block (Buffered(1))
        + 2 * 2 * hidden * tf_eff * _isz(w_gate_up)     # gate + up blocks
        + 2 * tf_eff * th * _isz(w_down)                # down block
        + 2 * tm_eff * th * _isz(x)                     # output block
        + tm_eff * th * 4                               # f32 accumulator
        + 3 * tm_eff * tf_eff * 4)                      # gate/up/act temps
    if vmem_limit_bytes is None:
        vmem_limit_bytes = int(footprint * 1.2) + 4 * 1024 * 1024
        vmem_limit_bytes = min(max(vmem_limit_bytes, 32 * 1024 * 1024),
                               100 * 1024 * 1024)

    out = pl.pallas_call(
        _qwen_mlp_kernel,
        out_shape=jax.ShapeDtypeStruct((m_pad, hidden), x.dtype),
        grid_spec=pltpu.PrefetchScalarGridSpec(
            num_scalar_prefetch=0,
            grid=grid,
            in_specs=[
                # x tile is j/k-invariant -> single buffer frees VMEM for the
                # larger streamed weight blocks.
                pl.BlockSpec((tm_eff, hidden), lambda i, j, k: (i, 0),
                             pipeline_mode=pl.Buffered(1)),
                gate_spec,                                       # W_gate view
                up_spec,                                         # W_up view
                pl.BlockSpec((tf_eff, th), lambda i, j, k: (k, j)),  # W_down
            ],
            out_specs=pl.BlockSpec((tm_eff, th), lambda i, j, k: (i, j)),
            scratch_shapes=[pltpu.VMEM((tm_eff, th), jnp.float32)],
        ),
        compiler_params=pltpu.CompilerParams(
            dimension_semantics=("parallel", "parallel", "arbitrary"),
            vmem_limit_bytes=vmem_limit_bytes,
        ),
    )(x2d, w_gate_in, w_up_in, w_down)

    if m_pad != m:
        out = out[:m]
    return out.reshape(orig_shape)


def _reference(x, w_gate_up, w_down):
    xf = x.astype(jnp.float32)
    gate_up = xf @ w_gate_up.astype(jnp.float32)
    ff = w_gate_up.shape[-1] // 2
    gate, up = gate_up[..., :ff], gate_up[..., ff:]
    act = jax.nn.silu(gate) * up
    return act @ w_down.astype(jnp.float32)


if __name__ == "__main__":
    key = jax.random.PRNGKey(0)
    k1, k2, k3, k4, k5, k6 = jax.random.split(key, 6)

    # --- Test 1: fast path, f32, multiple ff tiles --------------------------
    hidden, ff = 32, 256            # intermediate_size = 512 -> ff_dim_in = 256
    wgu = jax.random.normal(k1, (hidden, 2 * ff), dtype=jnp.float32) * 0.05
    wd = jax.random.normal(k2, (ff, hidden), dtype=jnp.float32) * 0.05
    x1 = jax.random.normal(k3, (8, hidden), dtype=jnp.float32)
    out1 = jax.block_until_ready(qwen_mlp(x1, wgu, wd, tf=128))
    ref1 = _reference(x1, wgu, wd)
    assert out1.shape == ref1.shape
    assert jnp.allclose(out1, ref1, atol=2e-3, rtol=2e-3), "f32 fast-path mismatch"

    # --- Test 2: fast path, bf16 weights/activations, odd token count -------
    x2 = jax.random.normal(k4, (13, hidden), dtype=jnp.float32)
    out2 = jax.block_until_ready(
        qwen_mlp(x2.astype(jnp.bfloat16), wgu.astype(jnp.bfloat16),
                 wd.astype(jnp.bfloat16), tf=128))
    ref2 = _reference(x2.astype(jnp.bfloat16), wgu.astype(jnp.bfloat16),
                      wd.astype(jnp.bfloat16))
    assert out2.shape == (13, hidden)
    assert jnp.allclose(out2.astype(jnp.float32), ref2, atol=5e-2, rtol=5e-2), \
        "bf16 mismatch"

    # --- Test 3: decode-style split over the output hidden axis (h_tiles=2) -
    hidden3, ff3 = 256, 256
    wgu3 = jax.random.normal(k5, (hidden3, 2 * ff3), dtype=jnp.float32) * 0.05
    wd3 = jax.random.normal(k6, (ff3, hidden3), dtype=jnp.float32) * 0.05
    x3 = jax.random.normal(k3, (8, hidden3), dtype=jnp.float32)
    out3 = jax.block_until_ready(qwen_mlp(x3, wgu3, wd3, tf=128, h_tiles=2))
    ref3 = _reference(x3, wgu3, wd3)
    assert jnp.allclose(out3, ref3, atol=2e-2, rtol=2e-2), "h_tiles mismatch"

    # --- Test 4: slow path (ff not a multiple of 128) ------------------------
    ff4 = 96
    wgu4 = jax.random.normal(k1, (hidden, 2 * ff4), dtype=jnp.float32) * 0.05
    wd4 = jax.random.normal(k2, (ff4, hidden), dtype=jnp.float32) * 0.05
    out4 = jax.block_until_ready(qwen_mlp(x1, wgu4, wd4))
    ref4 = _reference(x1, wgu4, wd4)
    assert jnp.allclose(out4, ref4, atol=2e-3, rtol=2e-3), "slow-path mismatch"

    print("KERNEL_OK")
</pallas_src>

<mosaic_0001>
module attributes {stable_mosaic.version = 11 : i64} {
  func.func @_qwen_mlp_kernel(%arg0: i32, %arg1: i32, %arg2: i32, %arg3: memref<8x32xf32, #tpu.memory_space<vmem>>, %arg4: memref<32x128xf32, #tpu.memory_space<vmem>>, %arg5: memref<32x128xf32, #tpu.memory_space<vmem>>, %arg6: memref<128x32xf32, #tpu.memory_space<vmem>>, %arg7: memref<8x32xf32, #tpu.memory_space<vmem>>, %arg8: memref<8x32xf32, #tpu.memory_space<vmem>>) attributes {dimension_semantics = [#tpu.dimension_semantics<parallel>, #tpu.dimension_semantics<parallel>, #tpu.dimension_semantics<arbitrary>], iteration_bounds = array<i64: 1, 1, 2>, scalar_prefetch = 0 : i64, scratch_operands = 1 : i64, tpu.core_type = #tpu.core_type<tc>, window_params = [{pipeline_mode = #tpu.pipeline_mode<synchronous>, transform_indices = @transform_0, window_bounds = array<i64: 8, 32>}, {transform_indices = @transform_1, window_bounds = array<i64: 32, 128>}, {transform_indices = @transform_2, window_bounds = array<i64: 32, 128>}, {transform_indices = @transform_3, window_bounds = array<i64: 128, 32>}, {transform_indices = @transform_4, window_bounds = array<i64: 8, 32>}]} {
    %c0_i32 = arith.constant 0 : i32
    %0 = arith.cmpi eq, %arg2, %c0_i32 : i32
    %1 = arith.extui %0 : i1 to i32
    %c0_i32_0 = arith.constant 0 : i32
    %2 = arith.cmpi ne, %1, %c0_i32_0 : i32
    scf.if %2 {
      %cst_16 = arith.constant 0.000000e+00 : f32
      %23 = vector.broadcast %cst_16 : f32 to vector<8x32xf32>
      %c0_17 = arith.constant 0 : index
      %c0_18 = arith.constant 0 : index
      %24 = vector.load %arg8[%c0_17, %c0_18] : memref<8x32xf32, #tpu.memory_space<vmem>>, vector<8x32xf32>
      tpu.vector_store %arg8[%c0_17, %c0_18], %23 {strides = array<i32>} : memref<8x32xf32, #tpu.memory_space<vmem>>, vector<8x32xf32>,
    } else {
    }
    %c0 = arith.constant 0 : index
    %c0_1 = arith.constant 0 : index
    %3 = vector.load %arg3[%c0, %c0_1] : memref<8x32xf32, #tpu.memory_space<vmem>>, vector<8x32xf32>
    %c0_2 = arith.constant 0 : index
    %c0_3 = arith.constant 0 : index
    %4 = vector.load %arg4[%c0_2, %c0_3] : memref<32x128xf32, #tpu.memory_space<vmem>>, vector<32x128xf32>
    %cst = arith.constant dense<0.000000e+00> : vector<8x128xf32>
    %5 = tpu.matmul %3, %4, %cst {dimension_numbers = #tpu.dot_dimension_numbers<[1], [0], [0], [1], [0, 0, 1, 1], [], []>} : vector<8x32xf32>, vector<32x128xf32>, vector<8x128xf32> -> vector<8x128xf32>
    %c0_4 = arith.constant 0 : index
    %c0_5 = arith.constant 0 : index
    %6 = vector.load %arg5[%c0_4, %c0_5] : memref<32x128xf32, #tpu.memory_space<vmem>>, vector<32x128xf32>
    %cst_6 = arith.constant dense<0.000000e+00> : vector<8x128xf32>
    %7 = tpu.matmul %3, %6, %cst_6 {dimension_numbers = #tpu.dot_dimension_numbers<[1], [0], [0], [1], [0, 0, 1, 1], [], []>} : vector<8x32xf32>, vector<32x128xf32>, vector<8x128xf32> -> vector<8x128xf32>
    %8 = arith.negf %5 : vector<8x128xf32>
    %9 = math.exp %8 : vector<8x128xf32>
    %cst_7 = arith.constant 1.000000e+00 : f32
    %10 = vector.broadcast %cst_7 : f32 to vector<8x128xf32>
    %11 = arith.addf %10, %9 : vector<8x128xf32>
    %12 = arith.divf %10, %11 : vector<8x128xf32>
    %13 = arith.mulf %5, %12 : vector<8x128xf32>
    %14 = arith.mulf %13, %7 : vector<8x128xf32>
    %c0_8 = arith.constant 0 : index
    %c0_9 = arith.constant 0 : index
    %15 = vector.load %arg8[%c0_8, %c0_9] : memref<8x32xf32, #tpu.memory_space<vmem>>, vector<8x32xf32>
    %c0_10 = arith.constant 0 : index
    %c0_11 = arith.constant 0 : index
    %16 = vector.load %arg6[%c0_10, %c0_11] : memref<128x32xf32, #tpu.memory_space<vmem>>, vector<128x32xf32>
    %cst_12 = arith.constant dense<0.000000e+00> : vector<8x32xf32>
    %17 = tpu.matmul %14, %16, %cst_12 {dimension_numbers = #tpu.dot_dimension_numbers<[1], [0], [0], [1], [0, 0, 1, 1], [], []>} : vector<8x128xf32>, vector<128x32xf32>, vector<8x32xf32> -> vector<8x32xf32>
    %18 = arith.addf %15, %17 : vector<8x32xf32>
    %c0_13 = arith.constant 0 : index
    %c0_14 = arith.constant 0 : index
    %19 = vector.load %arg8[%c0_13, %c0_14] : memref<8x32xf32, #tpu.memory_space<vmem>>, vector<8x32xf32>
    tpu.vector_store %arg8[%c0_13, %c0_14], %18 {strides = array<i32>} : memref<8x32xf32, #tpu.memory_space<vmem>>, vector<8x32xf32>,
    %c1_i32 = arith.constant 1 : i32
    %20 = arith.cmpi eq, %arg2, %c1_i32 : i32
    %21 = arith.extui %20 : i1 to i32
    %c0_i32_15 = arith.constant 0 : i32
    %22 = arith.cmpi ne, %21, %c0_i32_15 : i32
    scf.if %22 {
      %c0_16 = arith.constant 0 : index
      %c0_17 = arith.constant 0 : index
      %23 = vector.load %arg8[%c0_16, %c0_17] : memref<8x32xf32, #tpu.memory_space<vmem>>, vector<8x32xf32>
      %c0_18 = arith.constant 0 : index
      %c0_19 = arith.constant 0 : index
      %24 = vector.load %arg7[%c0_18, %c0_19] : memref<8x32xf32, #tpu.memory_space<vmem>>, vector<8x32xf32>
      tpu.vector_store %arg7[%c0_18, %c0_19], %23 {strides = array<i32>} : memref<8x32xf32, #tpu.memory_space<vmem>>, vector<8x32xf32>,
    } else {
    }
    return
  }
  func.func @transform_0(%arg0: i32, %arg1: i32, %arg2: i32) -> (i32, i32) {
    %c0_i32 = arith.constant 0 : i32
    %c0_i32_0 = arith.constant 0 : i32
    return %arg0, %c0_i32 : i32, i32
  }
  func.func @transform_1(%arg0: i32, %arg1: i32, %arg2: i32) -> (i32, i32) {
    %c0_i32 = arith.constant 0 : i32
    %c0_i32_0 = arith.constant 0 : i32
    return %c0_i32, %arg2 : i32, i32
  }
  func.func @transform_2(%arg0: i32, %arg1: i32, %arg2: i32) -> (i32, i32) {
    %c2_i32 = arith.constant 2 : i32
    %0 = arith.addi %arg2, %c2_i32 : i32
    %c0_i32 = arith.constant 0 : i32
    %c0_i32_0 = arith.constant 0 : i32
    return %c0_i32, %0 : i32, i32
  }
  func.func @transform_3(%arg0: i32, %arg1: i32, %arg2: i32) -> (i32, i32) {
    %c0_i32 = arith.constant 0 : i32
    return %arg2, %arg1 : i32, i32
  }
  func.func @transform_4(%arg0: i32, %arg1: i32, %arg2: i32) -> (i32, i32) {
    %c0_i32 = arith.constant 0 : i32
    return %arg0, %arg1 : i32, i32
  }
}

</mosaic_0001>

<bundles_post_ra>
// kernel: tpu_custom_call.1
= control target key start
LH: loop header
LB: loop body
LE: loop exit
PB: predicated region body
PF: predicated region fallthrough
CT: control target
= control target key end

     0   :  { %9 = vsyncpa [#allocation6], 0  ;;  %s833_s15 = smov 0   ;;  %s835_s16 = smov 0   ;;  %s977_s0 = inlined_call_operand.vmem [shape: f32[8,32], index: 0, kind: input, shape index: {}]   ;;  %s978_s1 = inlined_call_operand.vmem [shape: f32[32,512], index: 1, kind: input, shape index: {}]   ;;  %s979_s2 = inlined_call_operand.vmem [shape: f32[32,512], index: 2, kind: input, shape index: {}]   ;;  %s980_s3 = inlined_call_operand.vmem [shape: f32[256,32], index: 3, kind: input, shape index: {}]   ;;  %s981_s4 = inlined_call_operand.hbm [shape: f32[8,32], index: 4, kind: output, shape index: {}]  }
   0x1   :  { %s837_s17 = smov 0   ;;  %s839_s18 = smov 0  }
   0x2   :  { %s841_s19 = smov 0   ;;  %s843_s20 = smov 0  }
   0x3   :  { %s845_s21 = smov 0  }
   0x4 LB: > { %s624_s22 = sadd.s32 4294967295, %s804_s21   ;;  %s27_s23 = sadd.s32 1, %s800_s20  ;;  %s804_s21 = sphi %s845_s21, %s15_s21   ;;  %s800_s20 = sphi %s843_s20, %s989_s20   ;;  %s796_s19 = sphi %s841_s19, %s988_s19   ;;  %s792_s18 = sphi %s839_s18, %s987_s18   ;;  %s788_s17 = sphi %s837_s17, %s986_s17   ;;  %s784_s16 = sphi %s835_s16, %s985_s16   ;;  %s780_s15 = sphi %s833_s15, %s984_s15  }
   0x5   : > { %p28_p0 = scmp.ge.s32.totalorder %s27_s23, 2  ;;  %s67_s24 = sadd.s32 1, %s792_s18 }
   0x6   : > { %p74_p1 = scmp.ne.s32.totalorder %s792_s18, %s788_s17  ;;  %p75_p2 = scmp.eq.s32.totalorder %s804_s21, 0 }
   0x7   : > { %s991_s23 = smov (%p28_p0, %s27_s23), 0  ;;  %s90_s26 = sadd.s32 2, %s800_s20 }
   0x8   : > { %p878_p3 = por %p75_p2, %p74_p1  ;;  %s64_s27 = ssub.s32 %s800_s20, %s991_s23 }
   0x9   : > { %s91_s28 = sadd.s32 2, %s991_s23  ;;  %p65_p4 = scmp.eq.s32.totalorder %s64_s27, 0 }
   0xa   : > { %s92_s29 = ssub.s32 %s90_s26, %s91_s28  ;;  %s95_s30 = sadd.s32 1, %s784_s16 }
   0xb   : > { %p93_p5 = scmp.eq.s32.totalorder %s92_s29, 0  ;;  %p102_p6 = scmp.ne.s32.totalorder %s784_s16, %s780_s15 }
   0xc   : > { %s888_s5 = scalar_select %p65_p4, %s792_s18, %s67_s24  }
   0xd   : > { %s891_s6 = scalar_select %p93_p5, %s784_s16, %s95_s30  }
   0xe   : > { %p897_p7 = por %p102_p6, %p75_p2  ;;  %p627_p8 = scmp.ge.s32.totalorder %s804_s21, 2 }
  0x10   : > { %191 = sbr.rel (%p627_p8) target bundleno = 37 (0x25), region = 20 }
  0x15   : > { %194 = sbr.rel (!%p878_p3) target bundleno = 29 (0x1d), region = 24  ;;  %s196_s8 = sand.u32 (%p878_p3), 1, %s792_s18  }
  0x16   : > { %s629_s9 = sshll.u32 (%p878_p3), %s800_s20, 3  ;;  %s628_s10 = sshll.u32 (%p878_p3), %s196_s8, 5 }
  0x17   : > { %s200_s13 = scalar_lea.vmem (%p878_p3), %s978_s1, %s629_s9  ;;  %s198_s14 = scalar_lea.vmem (%p878_p3), [#allocation3], %s628_s10 }
  0x18   : > { %v235_v0 = vld [vmem:[%s200_s13] sm:$0xff] (%p878_p3) }
  0x19   : > { %v237_v1 = vld [vmem:[%s200_s13 + $0x20] sm:$0xff] (%p878_p3)  ;;  %236 = vst [vmem:[%s198_s14] sm:$0xff] (%p878_p3), %v235_v0 }
  0x1a   : > { %v239_v2 = vld [vmem:[%s200_s13 + $0x40] sm:$0xff]  ;;  %238 = vst [vmem:[%s198_s14 + $0x8] sm:$0xff] %v237_v1 }
  0x1b   : > { %v241_v3 = vld [vmem:[%s200_s13 + $0x60] sm:$0xff]  ;;  %240 = vst [vmem:[%s198_s14 + $0x10] sm:$0xff] %v239_v2 }
  0x1c   : > { %242 = vst [vmem:[%s198_s14 + $0x18] sm:$0xff] %v241_v3 }
  0x1d PF: > { %248 = sbr.rel (!%p897_p7) target bundleno = 37 (0x25), region = 62  ;;  %s250_s24 = sand.u32 (%p897_p7), 1, %s784_s16  }
  0x1e   : > { %s631_s25 = sshll.u32 (%p897_p7), %s800_s20, 3  ;;  %s630_s26 = sshll.u32 (%p897_p7), %s250_s24, 5 }
  0x1f   : > { %s540_s29 = scalar_lea.vmem (%p897_p7), %s979_s2, %s631_s25  ;;  %s252_s30 = scalar_lea.vmem (%p897_p7), [#allocation4], %s630_s26 }
  0x20   : > { %v632_v4 = vld [vmem:[%s540_s29 + $0x10] sm:$0xff] (%p897_p7) }
  0x21   : > { %v633_v5 = vld [vmem:[%s540_s29 + $0x30] sm:$0xff] (%p897_p7)  ;;  %291 = vst [vmem:[%s252_s30] sm:$0xff] (%p897_p7), %v632_v4 }
  0x22   : > { %v634_v6 = vld [vmem:[%s540_s29 + $0x50] sm:$0xff]  ;;  %293 = vst [vmem:[%s252_s30 + $0x8] sm:$0xff] %v633_v5 }
  0x23   : > { %v635_v7 = vld [vmem:[%s540_s29 + $0x70] sm:$0xff]  ;;  %295 = vst [vmem:[%s252_s30 + $0x10] sm:$0xff] %v634_v6 }
  0x24   : > { %297 = vst [vmem:[%s252_s30 + $0x18] sm:$0xff] %v635_v7 }
  0x25 PF: > { %p636_p9 = scmp.ge.s32.totalorder %s804_s21, 1  ;;  %p314_p10 = scmp.lt.s32.totalorder %s804_s21, 3 }
  0x27   : > { %p315_p11 = pnand %p636_p9, %p314_p10 }
  0x28   : > { %s321_s7 = sand.u32 (!%p315_p11), 1, %s788_s17   ;;  %s328_s8 = sand.u32 (!%p315_p11), 1, %s780_s15  }
  0x29   : > { %318 = sbr.rel (%p315_p11) target bundleno = 368 (0x170), region = 104  ;;  %s637_s9 = sshll.u32 (!%p315_p11), %s321_s7, 5 }
  0x2a   : > { %s638_s10 = sshll.u32 (!%p315_p11), %s328_s8, 5  ;;  %s639_s11 = sshll.u32 (!%p315_p11), %s796_s19, 4 }
  0x2b   : > { %p370_p12 = scmp.lt.s32.totalorder (!%p315_p11), %s639_s11, 31  ;;  %s323_s25 = scalar_lea.vmem (!%p315_p11), [#allocation3], %s637_s9 }
  0x2c   : > { %s330_s26 = scalar_lea.vmem (!%p315_p11), [#allocation4], %s638_s10  ;;  %p641_p13 = scmp.ne.s32.totalorder (!%p315_p11), %s796_s19, 0 }
  0x2e   : > { %s993_s11 = smov (!%p370_p12, %s639_s11), 31  ;;  %381 = sbr.rel (%p641_p13) target bundleno = 53 (0x35), region = 116 }
  0x2f   : > { %s640_s12 = sshll.u32 %s993_s11, 3 }
  0x30   : > { %s924_s24 = scalar_lea.vmem %s980_s3, %s640_s12 }
  0x33   : > { %vm382_vm0 = vcmask 261120   ;;  %v806_v8 = vmov 0.0  }
  0x34   : > { %383 = vst.msk [vmem:[#allocation2] sm:$0xff] %vm382_vm0, %v806_v8 }
  0x35 PF: > { %v388_v9 = vld [vmem:[%s323_s25 + $0x18] sm:$0xff]  ;;  %v387_v10 = vld [vmem:[%s323_s25 + $0x10] sm:$0xff]  ;;  %v386_v12 = vld [vmem:[%s323_s25 + $0x8] sm:$0xff]  ;;  %vm389_vm1 = vcmask 261120   ;;  %p645_p0 = scmp.ne.s32.totalorder %s796_s19, 1 }
  0x36   : > { %405 = vmatpush.msra.mxu0 %v388_v9  ;;  %v416_v11 = vld [vmem:[%s330_s26 + $0x18] sm:$0xff]  ;;  %v415_v13 = vld [vmem:[%s330_s26 + $0x10] sm:$0xff]  ;;  %v414_v14 = vld [vmem:[%s330_s26 + $0x8] sm:$0xff] }
  0x37   : > { %429 = vmatpush.msra.mxu1 %v416_v11  ;;  %v385_v15 = vld [vmem:[%s323_s25] sm:$0xff]  ;;  %v384_v16 = vld [vmem:[%s977_s0] sm:$0xff]  ;;  %v474_v18 = vld [vmem:[%s924_s24 + $0x78] sm:$0xff] }
  0x38   : > { %406 = vmatpush.msra.mxu0 %v387_v10  ;;  %v413_v17 = vld [vmem:[%s330_s26] sm:$0xff]  ;;  %475 = vmatpush.msra.mxu2 %v474_v18  ;;  %v473_v19 = vld [vmem:[%s924_s24 + $0x70] sm:$0xff]  ;;  %v471_v21 = vld [vmem:[%s924_s24 + $0x60] sm:$0xff] }
  0x39   : > { %430 = vmatpush.msra.mxu1 %v415_v13  ;;  %v472_v20 = vld [vmem:[%s924_s24 + $0x68] sm:$0xff]  ;;  %v470_v22 = vld [vmem:[%s924_s24 + $0x58] sm:$0xff]  ;;  %v469_v23 = vld [vmem:[%s924_s24 + $0x50] sm:$0xff] }
  0x3a   : > { %407 = vmatpush.msra.mxu0 %v386_v12  ;;  %476 = vmatpush.msra.mxu2 %v473_v19  ;;  %v468_v24 = vld [vmem:[%s924_s24 + $0x48] sm:$0xff]  ;;  %v467_v25 = vld [vmem:[%s924_s24 + $0x40] sm:$0xff]  ;;  %v466_v26 = vld [vmem:[%s924_s24 + $0x38] sm:$0xff] }
  0x3b   : > { %431 = vmatpush.msra.mxu1 %v414_v14  ;;  %v465_v27 = vld [vmem:[%s924_s24 + $0x30] sm:$0xff]  ;;  %v464_v28 = vld [vmem:[%s924_s24 + $0x28] sm:$0xff]  ;;  %v463_v29 = vld [vmem:[%s924_s24 + $0x20] sm:$0xff] }
  0x3c   : > { %408 = vmatpush.msra.mxu0 %v385_v15  ;;  %477 = vmatpush.msra.mxu2 %v472_v20  ;;  %v462_v30 = vld [vmem:[%s924_s24 + $0x18] sm:$0xff]  ;;  %v461_v31 = vld [vmem:[%s924_s24 + $0x10] sm:$0xff]  ;;  %v460_v32 = vld [vmem:[%s924_s24 + $0x8] sm:$0xff] }
  0x3d   : > { %642 = vmatmul.msk.f32.vlgmr.msra.gmra.mxu0 %vm389_vm1, %v384_v16  ;;  %432 = vmatpush.msra.mxu1 %v413_v17  ;;  %v459_v33 = vld [vmem:[%s924_s24] sm:$0xff] }
  0x3e   : > { %643 = vmatmul.msk.f32.vlgmr.msra.gmra.mxu1 %vm389_vm1, %v384_v16  ;;  %478 = vmatpush.msra.mxu2 %v471_v21  ;;  %v458_v51 = vld [vmem:[#allocation2] sm:$0xff] }
  0x40   : > { %479 = vmatpush.msra.mxu2 %v470_v22 }
  0x42   : > { %480 = vmatpush.msra.mxu2 %v469_v23 }
  0x44   : > { %481 = vmatpush.msra.mxu2 %v468_v24 }
  0x46   : > { %482 = vmatpush.msra.mxu2 %v467_v25 }
  0x48   : > { %483 = vmatpush.msra.mxu2 %v466_v26 }
  0x4a   : > { %484 = vmatpush.msra.mxu2 %v465_v27 }
  0x4c   : > { %485 = vmatpush.msra.mxu2 %v464_v28 }
  0x4e   : > { %486 = vmatpush.msra.mxu2 %v463_v29 }
  0x50   : > { %487 = vmatpush.msra.mxu2 %v462_v30 }
  0x52   : > { %488 = vmatpush.msra.mxu2 %v461_v31 }
  0x54   : > { %489 = vmatpush.msra.mxu2 %v460_v32 }
  0x56   : > { %490 = vmatpush.msra.mxu2 %v459_v33 }
  0xba   : > { %v410_v34 = vpop.f32.mrf.mxu0 }
  0xbb   : > { %v644_v35 = vmul.f32 -1.442695, %v410_v34  ;;  %v434_v48 = vpop.f32.mrf.mxu1 }
  0xbd   : > { %714 = vpow2.f32 %v644_v35 }
  0xc3   : > { %v715_v36 = vpop.eup %714 }
  0xc4   : > { %v440_v37 = vadd.f32 1.0, %v715_v36 }
  0xc6   : > { %716 = vrcp.f32 %v440_v37  ;;  %v452_v41 = vand.u32 2147483648, %v440_v37  ;;  %v450_v43 = vand.u32 2147483647, %v440_v37  ;;  %vm446_vm3 = vweird.f32 %v440_v37 }
  0xc8   : > { %v453_v45 = vor.u32 1.1754944e-38, %v452_v41  ;;  %vm451_vm5 = vcmp.eq.f32.partialorder %v450_v43, 8.507059e+37 }
  0xcc   : > { %v717_v38 = vpop.eup %716 }
  0xcd   : > { %v442_v39 = vmul.f32 %v717_v38, %v440_v37  ;;  %vm447_vm2 = vweird.f32 %v717_v38 }
  0xce   : > { %vm448_vm4 = vmor %vm446_vm3, %vm447_vm2 }
  0xcf   : > { %v443_v40 = vsub.f32 1.0, %v442_v39 }
  0xd1   : > { %v444_v42 = vmul.f32 %v717_v38, %v443_v40 }
  0xd3   : > { %v445_v44 = vadd.f32 %v717_v38, %v444_v42 }
  0xd5   : > { %v449_v46 = vsel %vm448_vm4, %v717_v38, %v445_v44 }
  0xd6   : > { %v454_v47 = vsel %vm451_vm5, %v453_v45, %v449_v46 }
  0xd7   : > { %v456_v49 = vmul.f32 %v454_v47, %v410_v34 }
  0xd9   : > { %v457_v50 = vmul.f32 %v456_v49, %v434_v48 }
  0xdb   : > { %491 = vmatmul.f32.vlgmr.msra.gmra.mxu2 %v457_v50 }
 0x15d   : > { %500 = sbr.rel (%p645_p0) target bundleno = 362 (0x16a), region = 120 }
 0x15e   : > { %v492_v52 = vpop.f32.mrf.mxu2 }
 0x15f   : > { %v495_v53 = vadd.f32 %v492_v52, %v458_v51 }
 0x161   : > { %496 = vst.msk [vmem:[#allocation2] sm:$0xff] %vm389_vm1, %v495_v53 }
 0x168   : > { %v501_v54 = vld [vmem:[#allocation2] sm:$0xff] }
 0x169   : > { %502 = vst.msk [vmem:[#allocation5] sm:$0xff] %vm389_vm1, %v501_v54 }
 0x16a PF: > { %p654_p1 = scmp.eq.s32.totalorder %s624_s22, 1  ;;  %s514_s29 = sshll.u32 %s981_s4, 4  ;;  %s515_s29 = int_to_ptr.hbm [resolvable:$true] %s514_s29 }
 0x16b   : > { %s807_s30 = smov [#allocation5]  }
 0x16c   : > { %s512_s7 = sshll.u32 %s807_s30, 4  ;;  %s513_s7 = int_to_ptr.vmem [resolvable:$true] %s512_s7 }
 0x16d   : > { %651 = dma.vmem_to_hbm [thread:$0]  (%p654_p1), %s513_s7, 128, %s515_s29, [#allocation6]  }
 0x16e   : > { %775 = dma.done.wait (%p654_p1), [#allocation6], 128  }
 0x16f   : > { %777 = vsyncadd (%p654_p1), [#allocation6], 4294967168 }
 0x170 PF: > { %s15_s21 = sadd.s32 1, %s804_s21   ;;  %s984_s15 = smov %s784_s16 }
 0x171   : > { %p12_p2 = scmp.ge.s32.totalorder %s15_s21, 4   ;;  %s985_s16 = smov %s891_s6 }
 0x172   : > { %s986_s17 = smov %s792_s18  ;;  %s987_s18 = smov %s888_s5 }
 0x173   : > { %s988_s19 = smov %s800_s20  ;;  %s989_s20 = smov %s991_s23 }
 0x174   :  { %14 = sbr.rel (!%p12_p2) target bundleno = 4 (0x4), region = 167 }
 0x179   :  { %528 = vsyncpa [#allocation6], 1 }
 0x17a   :  { %530 = vsyncpa [#allocation6 + $0x1], 1 }

</bundles_post_ra>
